<compile_context>
chip_gen: v7x
topology: tpu7x:2x2x1
jax: 0.10.0
libtpu: 0.0.40
codegen_flags: <defaults>
</compile_context>

<pallas_src>
import functools

import numpy as np
import jax
import jax.numpy as jnp
from jax.experimental import pallas as pl
from jax.experimental.pallas import tpu as pltpu


def _round_up(x, m):
    return ((x + m - 1) // m) * m


# ----------------------------------------------------------------------------
# Pallas kernel: pairwise matching-cost matrix
# ----------------------------------------------------------------------------
def _recip(x):
    # EUP approximate reciprocal + one Newton-Raphson step (keeps ~1e-6 rel
    # error so the 1e-4 correctness tolerance holds while the divide moves
    # off the VALU slot onto the otherwise-idle EUP).
    r = pl.reciprocal(x, approx=True)
    return r * (2.0 - x * r)


_EPS = 1e-12  # guards recip() against degenerate (zero-area) boxes


def _cost_kernel(logits_ref, boxes_ref, onehot_ref, tbox_ref, out_ref,
                 prob_ref, *, w_class, w_bbox, w_giou):
    # logits_ref : (tm, C_pad)   prediction logits tile (native dtype)
    # boxes_ref  : (tm, 4)       prediction boxes tile (cx, cy, w, h)
    # onehot_ref : (C_pad, tt)   one-hot of target class ids (bf16)
    # tbox_ref   : (4,  tt)      target boxes, transposed (cx, cy, w, h rows)
    # out_ref    : (tm, tt)      cost tile
    # prob_ref   : (tm, C_pad)   f32 VMEM scratch: (-w_class) * softmax(logits)
    #
    # Softmax (max/exp/sum/recip over the class axis) only depends on the row
    # tile, so compute it once per row tile (j == 0) and reuse for every
    # target tile j.  Grid axis 1 is "arbitrary" (sequential per core).
    @pl.when(pl.program_id(1) == 0)
    def _():
        logits = logits_ref[...].astype(jnp.float32)
        m = jnp.max(logits, axis=-1, keepdims=True)
        e = jnp.exp(logits - m)                                    # (tm, C_pad)
        s = jnp.sum(e, axis=-1, keepdims=True)                     # (tm, 1)
        # Fold -w_class into the normalization so the matmul output needs no
        # further full-(tm,tt) normalize / negate / weight ops.
        prob_ref[...] = e * (_recip(s) * (-w_class))

    # cost_class (already weighted & negated): (-w_class*softmax) @ onehot
    cost = jnp.dot(prob_ref[...], onehot_ref[...].astype(jnp.float32),
                   preferred_element_type=jnp.float32)             # (tm, tt)

    b = boxes_ref[...].astype(jnp.float32)                         # (tm, 4)
    t = tbox_ref[...].astype(jnp.float32)                          # (4,  tt)

    # cost_bbox = w_bbox * L1 cdist, folded into the small operands when the
    # weight is non-negative (|w*a - w*b| == w*|a-b| for w >= 0), accumulated
    # straight into the running cost (no zeros init, no separate temporary).
    if w_bbox >= 0.0:
        bw = b * w_bbox
        tw = t * w_bbox
        cost = cost + jnp.abs(bw[:, 0:1] - tw[0:1, :])
        cost = cost + jnp.abs(bw[:, 1:2] - tw[1:2, :])
        cost = cost + jnp.abs(bw[:, 2:3] - tw[2:3, :])
        cost = cost + jnp.abs(bw[:, 3:4] - tw[3:4, :])
    else:  # unusual configuration; keep exact semantics
        l1 = jnp.abs(b[:, 0:1] - t[0:1, :])
        l1 = l1 + jnp.abs(b[:, 1:2] - t[1:2, :])
        l1 = l1 + jnp.abs(b[:, 2:3] - t[2:3, :])
        l1 = l1 + jnp.abs(b[:, 3:4] - t[3:4, :])
        cost = cost + w_bbox * l1

    # cxcywh -> xyxy (small (tm,1)/(1,tt) tiles)
    px0 = b[:, 0:1] - 0.5 * b[:, 2:3]
    py0 = b[:, 1:2] - 0.5 * b[:, 3:4]
    px1 = b[:, 0:1] + 0.5 * b[:, 2:3]
    py1 = b[:, 1:2] + 0.5 * b[:, 3:4]
    tx0 = t[0:1, :] - 0.5 * t[2:3, :]
    ty0 = t[1:2, :] - 0.5 * t[3:4, :]
    tx1 = t[0:1, :] + 0.5 * t[2:3, :]
    ty1 = t[1:2, :] + 0.5 * t[3:4, :]

    area_p = (px1 - px0) * (py1 - py0)                             # (tm, 1)
    area_t = (tx1 - tx0) * (ty1 - ty0)                             # (1,  tt)

    # Generalized IoU, restructured:
    #   -giou = 1 - inter/union - union/area_e
    iw = jnp.maximum(jnp.minimum(px1, tx1) - jnp.maximum(px0, tx0), 0.0)
    ih = jnp.maximum(jnp.minimum(py1, ty1) - jnp.maximum(py0, ty0), 0.0)
    inter = iw * ih
    union = jnp.maximum(area_p + area_t - inter, _EPS)

    ew = jnp.maximum(px1, tx1) - jnp.minimum(px0, tx0)
    eh = jnp.maximum(py1, ty1) - jnp.minimum(py0, ty0)
    area_e = jnp.maximum(ew * eh, _EPS)

    cost = cost + w_giou * (1.0 - inter * _recip(union)
                            - union * _recip(area_e))

    out_ref[...] = cost.astype(out_ref.dtype)


def compute_cost_matrix(pred_logits, pred_boxes, tgt_ids, tgt_bbox,
                        cost_class=1.0, cost_bbox=1.0, cost_giou=1.0,
                        block_n=512, block_t_max=512):
    """Returns C of shape (bs, num_queries, total_num_targets), float32."""
    bs, nq, num_classes = pred_logits.shape
    N = bs * nq
    T = int(tgt_ids.shape[0])
    assert T > 0, "empty-target case is handled on the host"

    # ---- tile / padding sizes ----------------------------------------------
    # Sub-32-bit logits dtypes pack along sublanes: round the row tile up to
    # the dtype's minimum sublane multiple (8 f32, 16 bf16, 32 int8/fp8).
    sublane = max(8, 32 // jnp.dtype(pred_logits.dtype).itemsize)
    block_n_eff = min(int(block_n), _round_up(N, sublane))
    N_pad = _round_up(N, block_n_eff)
    C_pad = _round_up(num_classes, 128)
    block_t = min(int(block_t_max), _round_up(T, 128))
    T_pad = _round_up(T, block_t)

    # ---- predictions (kept in native dtype; cast happens inside the kernel) -
    logits2 = pred_logits.reshape(N, num_classes)
    boxes2 = pred_boxes.reshape(N, 4)

    neg = jnp.asarray(-1e30, dtype=logits2.dtype)
    if C_pad > num_classes:  # padded classes must not perturb the softmax
        logits2 = jnp.pad(logits2, ((0, 0), (0, C_pad - num_classes)),
                          constant_values=neg)
    if N_pad > N:
        logits2 = jnp.pad(logits2, ((0, N_pad - N), (0, 0)))
        dummy = jnp.asarray([0.5, 0.5, 1.0, 1.0], dtype=boxes2.dtype)
        boxes2 = jnp.concatenate(
            [boxes2, jnp.broadcast_to(dummy, (N_pad - N, 4))], axis=0)

    # ---- targets (lane-dense along T_pad) -----------------------------------
    # bf16 one-hot is exact for 0/1 and halves the per-row-tile re-streamed
    # HBM->VMEM traffic; it is cast back to f32 inside the kernel before the
    # matmul so the class cost stays full precision.
    onehot = jax.nn.one_hot(tgt_ids, C_pad, dtype=jnp.bfloat16).T   # (C_pad, T)
    tbox_t = tgt_bbox.astype(jnp.float32).T                         # (4, T)
    if T_pad > T:
        onehot = jnp.pad(onehot, ((0, 0), (0, T_pad - T)))          # zero cols
        dummy_col = jnp.asarray([[0.5], [0.5], [1.0], [1.0]], dtype=jnp.float32)
        tbox_t = jnp.concatenate(
            [tbox_t, jnp.broadcast_to(dummy_col, (4, T_pad - T))], axis=1)

    kernel = functools.partial(_cost_kernel, w_class=float(cost_class),
                               w_bbox=float(cost_bbox), w_giou=float(cost_giou))

    # TODO(synk): if T_pad/block_t >> N_pad/block_n, swapping the grid order
    # (targets outer, rows inner) would cut re-streaming of the larger
    # operand; not needed at typical DETR-style shapes.
    grid = (N_pad // block_n_eff, T_pad // block_t)
    out = pl.pallas_call(
        kernel,
        out_shape=jax.ShapeDtypeStruct((N_pad, T_pad), jnp.float32),
        grid_spec=pltpu.PrefetchScalarGridSpec(
            num_scalar_prefetch=0,
            grid=grid,
            in_specs=[
                pl.BlockSpec((block_n_eff, C_pad), lambda i, j: (i, 0)),
                pl.BlockSpec((block_n_eff, 4), lambda i, j: (i, 0)),
                pl.BlockSpec((C_pad, block_t), lambda i, j: (0, j)),
                pl.BlockSpec((4, block_t), lambda i, j: (0, j)),
            ],
            out_specs=pl.BlockSpec((block_n_eff, block_t), lambda i, j: (i, j)),
            scratch_shapes=[pltpu.VMEM((block_n_eff, C_pad), jnp.float32)],
        ),
        # Row axis parallel (megacore split on v7x); target axis must iterate
        # sequentially per core so the softmax scratch is valid across j.
        compiler_params=pltpu.CompilerParams(
            dimension_semantics=("parallel", "arbitrary")),
    )(logits2, boxes2, onehot, tbox_t)

    return out[:N, :T].reshape(bs, nq, T)


# ----------------------------------------------------------------------------
# Host-side exact Hungarian assignment (replaces scipy.linear_sum_assignment)
# ----------------------------------------------------------------------------
# TODO(synk): linear_sum_assignment is inherently sequential; it stays on the
# host (exact NumPy Hungarian) rather than inside the Pallas kernel.
def linear_sum_assignment_np(cost):
    cost = np.asarray(cost, dtype=np.float64)
    transposed = cost.shape[0] > cost.shape[1]
    C = cost.T if transposed else cost
    n, m = C.shape
    if n == 0:
        return np.array([], dtype=np.int64), np.array([], dtype=np.int64)
    INF = float("inf")
    u = np.zeros(n + 1)
    v = np.zeros(m + 1)
    p = np.zeros(m + 1, dtype=np.int64)     # column -> matched row (1-indexed)
    way = np.zeros(m + 1, dtype=np.int64)
    for i in range(1, n + 1):
        p[0] = i
        j0 = 0
        minv = np.full(m + 1, INF)
        used = np.zeros(m + 1, dtype=bool)
        while True:
            used[j0] = True
            i0 = p[j0]
            delta = INF
            j1 = -1
            for j in range(1, m + 1):
                if not used[j]:
                    cur = C[i0 - 1, j - 1] - u[i0] - v[j]
                    if cur < minv[j]:
                        minv[j] = cur
                        way[j] = j0
                    if minv[j] < delta:
                        delta = minv[j]
                        j1 = j
            for j in range(m + 1):
                if used[j]:
                    u[p[j]] += delta
                    v[j] -= delta
                else:
                    minv[j] -= delta
            j0 = j1
            if p[j0] == 0:
                break
        while True:
            j1 = way[j0]
            p[j0] = p[j1]
            j0 = j1
            if j0 == 0:
                break
    rows, cols = [], []
    for j in range(1, m + 1):
        if p[j] != 0:
            rows.append(p[j] - 1)
            cols.append(j - 1)
    rows = np.asarray(rows, dtype=np.int64)
    cols = np.asarray(cols, dtype=np.int64)
    if transposed:
        rows, cols = cols, rows
    order = np.argsort(rows, kind="stable")
    return rows[order], cols[order]


# ----------------------------------------------------------------------------
# Matcher (mirrors HungarianMatcher_GroupMatch.forward)
# ----------------------------------------------------------------------------
class HungarianMatcherGroupMatchPallas:
    def __init__(self, cost_class=1.0, cost_bbox=1.0, cost_giou=1.0,
                 num_group=1, topk=1):
        assert cost_class != 0 or cost_bbox != 0 or cost_giou != 0
        self.cost_class = cost_class
        self.cost_bbox = cost_bbox
        self.cost_giou = cost_giou
        self.num_group = num_group
        self.matcher_topk = topk

    def cost_matrix(self, outputs, targets):
        tgt_ids = jnp.concatenate([v["labels"] for v in targets])
        tgt_bbox = jnp.concatenate([v["boxes"] for v in targets])
        return compute_cost_matrix(
            outputs["pred_logits"], outputs["pred_boxes"], tgt_ids, tgt_bbox,
            cost_class=self.cost_class, cost_bbox=self.cost_bbox,
            cost_giou=self.cost_giou)

    def forward(self, outputs, targets):
        bs, num_queries = outputs["pred_logits"].shape[:2]
        sizes = [int(v["boxes"].shape[0]) for v in targets]
        C = np.asarray(self.cost_matrix(outputs, targets))  # (bs, nq, sum(sizes))

        splits = np.cumsum(sizes)[:-1]
        if self.num_group == 1:
            C_split = np.split(C, splits, axis=-1)
            indices = [linear_sum_assignment_np(c[i]) for i, c in enumerate(C_split)]
        elif self.num_group > 1:
            g_nq = num_queries // self.num_group
            indices = []
            for g_i in range(self.num_group):
                C_g = C[:, g_i * g_nq:(g_i + 1) * g_nq, :]
                indices_g = [linear_sum_assignment_np(c[i])
                             for i, c in enumerate(np.split(C_g, splits, axis=-1))]
                if g_i == 0:
                    indices = indices_g
                else:
                    indices = [(np.concatenate([a[0], b[0] + g_nq * g_i]),
                                np.concatenate([a[1], b[1]]))
                               for a, b in zip(indices, indices_g)]
        else:
            raise NotImplementedError
        return [(np.asarray(i, dtype=np.int64), np.asarray(j, dtype=np.int64))
                for i, j in indices]


# ----------------------------------------------------------------------------
# Pure-JAX reference for the cost matrix (correctness check)
# ----------------------------------------------------------------------------
def _cxcywh_to_xyxy(b):
    cx, cy, w, h = b[..., 0], b[..., 1], b[..., 2], b[..., 3]
    return jnp.stack([cx - 0.5 * w, cy - 0.5 * h, cx + 0.5 * w, cy + 0.5 * h], -1)


def _ref_cost(pred_logits, pred_boxes, tgt_ids, tgt_bbox, wc, wb, wg):
    bs, nq, nc = pred_logits.shape
    prob = jax.nn.softmax(pred_logits.reshape(-1, nc).astype(jnp.float32), axis=-1)
    ob = pred_boxes.reshape(-1, 4).astype(jnp.float32)
    tgt_bbox = tgt_bbox.astype(jnp.float32)
    cost_class = -prob[:, tgt_ids]
    cost_bbox = jnp.sum(jnp.abs(ob[:, None, :] - tgt_bbox[None, :, :]), -1)
    b1 = _cxcywh_to_xyxy(ob)
    b2 = _cxcywh_to_xyxy(tgt_bbox)
    a1 = (b1[:, 2] - b1[:, 0]) * (b1[:, 3] - b1[:, 1])
    a2 = (b2[:, 2] - b2[:, 0]) * (b2[:, 3] - b2[:, 1])
    lt = jnp.maximum(b1[:, None, :2], b2[None, :, :2])
    rb = jnp.minimum(b1[:, None, 2:], b2[None, :, 2:])
    wh = jnp.clip(rb - lt, 0)
    inter = wh[..., 0] * wh[..., 1]
    union = a1[:, None] + a2[None, :] - inter
    iou = inter / union
    lte = jnp.minimum(b1[:, None, :2], b2[None, :, :2])
    rbe = jnp.maximum(b1[:, None, 2:], b2[None, :, 2:])
    whe = jnp.clip(rbe - lte, 0)
    areae = whe[..., 0] * whe[..., 1]
    giou = iou - (areae - union) / areae
    return (wb * cost_bbox + wc * cost_class + wg * (-giou)).reshape(bs, nq, -1)


# ----------------------------------------------------------------------------
if __name__ == "__main__":
    key = jax.random.PRNGKey(0)
    bs, nq, num_classes = 2, 8, 32
    k1, k2, k3, k4 = jax.random.split(key, 4)

    pred_logits = jax.random.normal(k1, (bs, nq, num_classes), dtype=jnp.float32)
    cxcy = jax.random.uniform(k2, (bs, nq, 2), minval=0.3, maxval=0.7)
    wh = jax.random.uniform(k3, (bs, nq, 2), minval=0.1, maxval=0.4)
    pred_boxes = jnp.concatenate([cxcy, wh], axis=-1)

    sizes = [3, 5]
    targets = []
    for i, s in enumerate(sizes):
        kk = jax.random.fold_in(k4, i)
        ka, kb, kc = jax.random.split(kk, 3)
        labels = jax.random.randint(ka, (s,), 0, num_classes)
        tcxcy = jax.random.uniform(kb, (s, 2), minval=0.3, maxval=0.7)
        twh = jax.random.uniform(kc, (s, 2), minval=0.1, maxval=0.4)
        targets.append({"labels": labels,
                        "boxes": jnp.concatenate([tcxcy, twh], axis=-1)})

    outputs = {"pred_logits": pred_logits, "pred_boxes": pred_boxes}
    matcher = HungarianMatcherGroupMatchPallas(
        cost_class=1.0, cost_bbox=5.0, cost_giou=2.0, num_group=1)

    # Run the Pallas kernel and block on the result.
    C = matcher.cost_matrix(outputs, targets)
    jax.block_until_ready(C)

    # Correctness check of the kernel against a pure-JAX reference.
    tgt_ids = jnp.concatenate([v["labels"] for v in targets])
    tgt_bbox = jnp.concatenate([v["boxes"] for v in targets])
    C_ref = _ref_cost(pred_logits, pred_boxes, tgt_ids, tgt_bbox, 1.0, 5.0, 2.0)
    assert np.allclose(np.asarray(C), np.asarray(C_ref), atol=1e-4, rtol=1e-4)

    # Full forward (cost matrix on TPU + exact Hungarian on host).
    indices = matcher.forward(outputs, targets)
    for i, (pi, gi) in enumerate(indices):
        assert len(pi) == len(gi) == min(nq, sizes[i])

    print("KERNEL_OK")
</pallas_src>

<mosaic_0001>
module attributes {stable_mosaic.version = 11 : i64} {
  func.func @_cost_kernel(%arg0: i32, %arg1: i32, %arg2: memref<16x128xf32, #tpu.memory_space<vmem>>, %arg3: memref<16x4xf32, #tpu.memory_space<vmem>>, %arg4: memref<128x128xbf16, #tpu.memory_space<vmem>>, %arg5: memref<4x128xf32, #tpu.memory_space<vmem>>, %arg6: memref<16x128xf32, #tpu.memory_space<vmem>>, %arg7: memref<16x128xf32, #tpu.memory_space<vmem>>) attributes {dimension_semantics = [#tpu.dimension_semantics<parallel>, #tpu.dimension_semantics<arbitrary>], iteration_bounds = array<i64: 1, 1>, scalar_prefetch = 0 : i64, scratch_operands = 1 : i64, tpu.core_type = #tpu.core_type<tc>, window_params = [{transform_indices = @transform_0, window_bounds = array<i64: 16, 128>}, {transform_indices = @transform_1, window_bounds = array<i64: 16, 4>}, {transform_indices = @transform_2, window_bounds = array<i64: 128, 128>}, {transform_indices = @transform_3, window_bounds = array<i64: 4, 128>}, {transform_indices = @transform_4, window_bounds = array<i64: 16, 128>}]} {
    %c0_i32 = arith.constant 0 : i32
    %0 = arith.cmpi eq, %arg1, %c0_i32 : i32
    %1 = arith.extui %0 : i1 to i32
    %c0_i32_0 = arith.constant 0 : i32
    %2 = arith.cmpi ne, %1, %c0_i32_0 : i32
    scf.if %2 {
      %c0_28 = arith.constant 0 : index
      %c0_29 = arith.constant 0 : index
      %148 = vector.load %arg2[%c0_28, %c0_29] : memref<16x128xf32, #tpu.memory_space<vmem>>, vector<16x128xf32>
      %cst_30 = arith.constant dense<0xFF800000> : vector<16xf32>
      %149 = vector.multi_reduction <maximumf>, %148, %cst_30 [1] : vector<16x128xf32> to vector<16xf32>
      %150 = vector.shape_cast %149 : vector<16xf32> to vector<16x1xf32>
      %151 = vector.broadcast %150 : vector<16x1xf32> to vector<16x128xf32>
      %152 = arith.subf %148, %151 : vector<16x128xf32>
      %153 = math.exp %152 : vector<16x128xf32>
      %cst_31 = arith.constant dense<0.000000e+00> : vector<16xf32>
      %154 = vector.multi_reduction <add>, %153, %cst_31 [1] : vector<16x128xf32> to vector<16xf32>
      %155 = vector.shape_cast %154 : vector<16xf32> to vector<16x1xf32>
      %156 = tpu.reciprocal %155 {approx = true} : vector<16x1xf32> -> vector<16x1xf32>
      %157 = arith.mulf %155, %156 : vector<16x1xf32>
      %cst_32 = arith.constant 2.000000e+00 : f32
      %158 = vector.broadcast %cst_32 : f32 to vector<16x1xf32>
      %159 = arith.subf %158, %157 : vector<16x1xf32>
      %160 = arith.mulf %156, %159 : vector<16x1xf32>
      %cst_33 = arith.constant -1.000000e+00 : f32
      %161 = vector.broadcast %cst_33 : f32 to vector<16x1xf32>
      %162 = arith.mulf %160, %161 : vector<16x1xf32>
      %163 = vector.broadcast %162 : vector<16x1xf32> to vector<16x128xf32>
      %164 = arith.mulf %153, %163 : vector<16x128xf32>
      %c0_34 = arith.constant 0 : index
      %c0_35 = arith.constant 0 : index
      %165 = vector.load %arg7[%c0_34, %c0_35] : memref<16x128xf32, #tpu.memory_space<vmem>>, vector<16x128xf32>
      tpu.vector_store %arg7[%c0_34, %c0_35], %164 {strides = array<i32>} : memref<16x128xf32, #tpu.memory_space<vmem>>, vector<16x128xf32>,
    } else {
    }
    %c0 = arith.constant 0 : index
    %c0_1 = arith.constant 0 : index
    %3 = vector.load %arg7[%c0, %c0_1] : memref<16x128xf32, #tpu.memory_space<vmem>>, vector<16x128xf32>
    %c0_2 = arith.constant 0 : index
    %c0_3 = arith.constant 0 : index
    %4 = vector.load %arg4[%c0_2, %c0_3] : memref<128x128xbf16, #tpu.memory_space<vmem>>, vector<128x128xbf16>
    %5 = arith.extf %4 : vector<128x128xbf16> to vector<128x128xf32>
    %cst = arith.constant dense<0.000000e+00> : vector<16x128xf32>
    %6 = tpu.matmul %3, %5, %cst {dimension_numbers = #tpu.dot_dimension_numbers<[1], [0], [0], [1], [0, 0, 1, 1], [], []>} : vector<16x128xf32>, vector<128x128xf32>, vector<16x128xf32> -> vector<16x128xf32>
    %c0_4 = arith.constant 0 : index
    %c0_5 = arith.constant 0 : index
    %7 = vector.load %arg3[%c0_4, %c0_5] : memref<16x4xf32, #tpu.memory_space<vmem>>, vector<16x4xf32>
    %c0_6 = arith.constant 0 : index
    %c0_7 = arith.constant 0 : index
    %8 = vector.load %arg5[%c0_6, %c0_7] : memref<4x128xf32, #tpu.memory_space<vmem>>, vector<4x128xf32>
    %cst_8 = arith.constant 5.000000e+00 : f32
    %9 = vector.broadcast %cst_8 : f32 to vector<16x4xf32>
    %10 = arith.mulf %7, %9 : vector<16x4xf32>
    %cst_9 = arith.constant 5.000000e+00 : f32
    %11 = vector.broadcast %cst_9 : f32 to vector<4x128xf32>
    %12 = arith.mulf %8, %11 : vector<4x128xf32>
    %13 = vector.extract_strided_slice %10 {offsets = [0, 0], sizes = [16, 1], strides = [1, 1]} : vector<16x4xf32> to vector<16x1xf32>
    %14 = vector.extract_strided_slice %12 {offsets = [0, 0], sizes = [1, 128], strides = [1, 1]} : vector<4x128xf32> to vector<1x128xf32>
    %15 = vector.broadcast %13 : vector<16x1xf32> to vector<16x128xf32>
    %16 = vector.broadcast %14 : vector<1x128xf32> to vector<16x128xf32>
    %17 = arith.subf %15, %16 : vector<16x128xf32>
    %18 = math.absf %17 : vector<16x128xf32>
    %19 = arith.addf %6, %18 : vector<16x128xf32>
    %20 = vector.extract_strided_slice %10 {offsets = [0, 1], sizes = [16, 1], strides = [1, 1]} : vector<16x4xf32> to vector<16x1xf32>
    %21 = vector.extract_strided_slice %12 {offsets = [1, 0], sizes = [1, 128], strides = [1, 1]} : vector<4x128xf32> to vector<1x128xf32>
    %22 = vector.broadcast %20 : vector<16x1xf32> to vector<16x128xf32>
    %23 = vector.broadcast %21 : vector<1x128xf32> to vector<16x128xf32>
    %24 = arith.subf %22, %23 : vector<16x128xf32>
    %25 = math.absf %24 : vector<16x128xf32>
    %26 = arith.addf %19, %25 : vector<16x128xf32>
    %27 = vector.extract_strided_slice %10 {offsets = [0, 2], sizes = [16, 1], strides = [1, 1]} : vector<16x4xf32> to vector<16x1xf32>
    %28 = vector.extract_strided_slice %12 {offsets = [2, 0], sizes = [1, 128], strides = [1, 1]} : vector<4x128xf32> to vector<1x128xf32>
    %29 = vector.broadcast %27 : vector<16x1xf32> to vector<16x128xf32>
    %30 = vector.broadcast %28 : vector<1x128xf32> to vector<16x128xf32>
    %31 = arith.subf %29, %30 : vector<16x128xf32>
    %32 = math.absf %31 : vector<16x128xf32>
    %33 = arith.addf %26, %32 : vector<16x128xf32>
    %34 = vector.extract_strided_slice %10 {offsets = [0, 3], sizes = [16, 1], strides = [1, 1]} : vector<16x4xf32> to vector<16x1xf32>
    %35 = vector.extract_strided_slice %12 {offsets = [3, 0], sizes = [1, 128], strides = [1, 1]} : vector<4x128xf32> to vector<1x128xf32>
    %36 = vector.broadcast %34 : vector<16x1xf32> to vector<16x128xf32>
    %37 = vector.broadcast %35 : vector<1x128xf32> to vector<16x128xf32>
    %38 = arith.subf %36, %37 : vector<16x128xf32>
    %39 = math.absf %38 : vector<16x128xf32>
    %40 = arith.addf %33, %39 : vector<16x128xf32>
    %41 = vector.extract_strided_slice %7 {offsets = [0, 0], sizes = [16, 1], strides = [1, 1]} : vector<16x4xf32> to vector<16x1xf32>
    %42 = vector.extract_strided_slice %7 {offsets = [0, 2], sizes = [16, 1], strides = [1, 1]} : vector<16x4xf32> to vector<16x1xf32>
    %cst_10 = arith.constant 5.000000e-01 : f32
    %43 = vector.broadcast %cst_10 : f32 to vector<16x1xf32>
    %44 = arith.mulf %43, %42 : vector<16x1xf32>
    %45 = arith.subf %41, %44 : vector<16x1xf32>
    %46 = vector.extract_strided_slice %7 {offsets = [0, 1], sizes = [16, 1], strides = [1, 1]} : vector<16x4xf32> to vector<16x1xf32>
    %47 = vector.extract_strided_slice %7 {offsets = [0, 3], sizes = [16, 1], strides = [1, 1]} : vector<16x4xf32> to vector<16x1xf32>
    %cst_11 = arith.constant 5.000000e-01 : f32
    %48 = vector.broadcast %cst_11 : f32 to vector<16x1xf32>
    %49 = arith.mulf %48, %47 : vector<16x1xf32>
    %50 = arith.subf %46, %49 : vector<16x1xf32>
    %51 = vector.extract_strided_slice %7 {offsets = [0, 0], sizes = [16, 1], strides = [1, 1]} : vector<16x4xf32> to vector<16x1xf32>
    %52 = vector.extract_strided_slice %7 {offsets = [0, 2], sizes = [16, 1], strides = [1, 1]} : vector<16x4xf32> to vector<16x1xf32>
    %cst_12 = arith.constant 5.000000e-01 : f32
    %53 = vector.broadcast %cst_12 : f32 to vector<16x1xf32>
    %54 = arith.mulf %53, %52 : vector<16x1xf32>
    %55 = arith.addf %51, %54 : vector<16x1xf32>
    %56 = vector.extract_strided_slice %7 {offsets = [0, 1], sizes = [16, 1], strides = [1, 1]} : vector<16x4xf32> to vector<16x1xf32>
    %57 = vector.extract_strided_slice %7 {offsets = [0, 3], sizes = [16, 1], strides = [1, 1]} : vector<16x4xf32> to vector<16x1xf32>
    %cst_13 = arith.constant 5.000000e-01 : f32
    %58 = vector.broadcast %cst_13 : f32 to vector<16x1xf32>
    %59 = arith.mulf %58, %57 : vector<16x1xf32>
    %60 = arith.addf %56, %59 : vector<16x1xf32>
    %61 = vector.extract_strided_slice %8 {offsets = [0, 0], sizes = [1, 128], strides = [1, 1]} : vector<4x128xf32> to vector<1x128xf32>
    %62 = vector.extract_strided_slice %8 {offsets = [2, 0], sizes = [1, 128], strides = [1, 1]} : vector<4x128xf32> to vector<1x128xf32>
    %cst_14 = arith.constant 5.000000e-01 : f32
    %63 = vector.broadcast %cst_14 : f32 to vector<1x128xf32>
    %64 = arith.mulf %63, %62 : vector<1x128xf32>
    %65 = arith.subf %61, %64 : vector<1x128xf32>
    %66 = vector.extract_strided_slice %8 {offsets = [1, 0], sizes = [1, 128], strides = [1, 1]} : vector<4x128xf32> to vector<1x128xf32>
    %67 = vector.extract_strided_slice %8 {offsets = [3, 0], sizes = [1, 128], strides = [1, 1]} : vector<4x128xf32> to vector<1x128xf32>
    %cst_15 = arith.constant 5.000000e-01 : f32
    %68 = vector.broadcast %cst_15 : f32 to vector<1x128xf32>
    %69 = arith.mulf %68, %67 : vector<1x128xf32>
    %70 = arith.subf %66, %69 : vector<1x128xf32>
    %71 = vector.extract_strided_slice %8 {offsets = [0, 0], sizes = [1, 128], strides = [1, 1]} : vector<4x128xf32> to vector<1x128xf32>
    %72 = vector.extract_strided_slice %8 {offsets = [2, 0], sizes = [1, 128], strides = [1, 1]} : vector<4x128xf32> to vector<1x128xf32>
    %cst_16 = arith.constant 5.000000e-01 : f32
    %73 = vector.broadcast %cst_16 : f32 to vector<1x128xf32>
    %74 = arith.mulf %73, %72 : vector<1x128xf32>
    %75 = arith.addf %71, %74 : vector<1x128xf32>
    %76 = vector.extract_strided_slice %8 {offsets = [1, 0], sizes = [1, 128], strides = [1, 1]} : vector<4x128xf32> to vector<1x128xf32>
    %77 = vector.extract_strided_slice %8 {offsets = [3, 0], sizes = [1, 128], strides = [1, 1]} : vector<4x128xf32> to vector<1x128xf32>
    %cst_17 = arith.constant 5.000000e-01 : f32
    %78 = vector.broadcast %cst_17 : f32 to vector<1x128xf32>
    %79 = arith.mulf %78, %77 : vector<1x128xf32>
    %80 = arith.addf %76, %79 : vector<1x128xf32>
    %81 = arith.subf %55, %45 : vector<16x1xf32>
    %82 = arith.subf %60, %50 : vector<16x1xf32>
    %83 = arith.mulf %81, %82 : vector<16x1xf32>
    %84 = arith.subf %75, %65 : vector<1x128xf32>
    %85 = arith.subf %80, %70 : vector<1x128xf32>
    %86 = arith.mulf %84, %85 : vector<1x128xf32>
    %87 = vector.broadcast %55 : vector<16x1xf32> to vector<16x128xf32>
    %88 = vector.broadcast %75 : vector<1x128xf32> to vector<16x128xf32>
    %89 = arith.minimumf %87, %88 : vector<16x128xf32>
    %90 = vector.broadcast %45 : vector<16x1xf32> to vector<16x128xf32>
    %91 = vector.broadcast %65 : vector<1x128xf32> to vector<16x128xf32>
    %92 = arith.maximumf %90, %91 : vector<16x128xf32>
    %93 = arith.subf %89, %92 : vector<16x128xf32>
    %cst_18 = arith.constant 0.000000e+00 : f32
    %94 = vector.broadcast %cst_18 : f32 to vector<16x128xf32>
    %95 = arith.maximumf %93, %94 : vector<16x128xf32>
    %96 = vector.broadcast %60 : vector<16x1xf32> to vector<16x128xf32>
    %97 = vector.broadcast %80 : vector<1x128xf32> to vector<16x128xf32>
    %98 = arith.minimumf %96, %97 : vector<16x128xf32>
    %99 = vector.broadcast %50 : vector<16x1xf32> to vector<16x128xf32>
    %100 = vector.broadcast %70 : vector<1x128xf32> to vector<16x128xf32>
    %101 = arith.maximumf %99, %100 : vector<16x128xf32>
    %102 = arith.subf %98, %101 : vector<16x128xf32>
    %cst_19 = arith.constant 0.000000e+00 : f32
    %103 = vector.broadcast %cst_19 : f32 to vector<16x128xf32>
    %104 = arith.maximumf %102, %103 : vector<16x128xf32>
    %105 = arith.mulf %95, %104 : vector<16x128xf32>
    %106 = vector.broadcast %83 : vector<16x1xf32> to vector<16x128xf32>
    %107 = vector.broadcast %86 : vector<1x128xf32> to vector<16x128xf32>
    %108 = arith.addf %106, %107 : vector<16x128xf32>
    %109 = arith.subf %108, %105 : vector<16x128xf32>
    %cst_20 = arith.constant 9.99999996E-13 : f32
    %110 = vector.broadcast %cst_20 : f32 to vector<16x128xf32>
    %111 = arith.maximumf %109, %110 : vector<16x128xf32>
    %112 = vector.broadcast %55 : vector<16x1xf32> to vector<16x128xf32>
    %113 = vector.broadcast %75 : vector<1x128xf32> to vector<16x128xf32>
    %114 = arith.maximumf %112, %113 : vector<16x128xf32>
    %115 = vector.broadcast %45 : vector<16x1xf32> to vector<16x128xf32>
    %116 = vector.broadcast %65 : vector<1x128xf32> to vector<16x128xf32>
    %117 = arith.minimumf %115, %116 : vector<16x128xf32>
    %118 = arith.subf %114, %117 : vector<16x128xf32>
    %119 = vector.broadcast %60 : vector<16x1xf32> to vector<16x128xf32>
    %120 = vector.broadcast %80 : vector<1x128xf32> to vector<16x128xf32>
    %121 = arith.maximumf %119, %120 : vector<16x128xf32>
    %122 = vector.broadcast %50 : vector<16x1xf32> to vector<16x128xf32>
    %123 = vector.broadcast %70 : vector<1x128xf32> to vector<16x128xf32>
    %124 = arith.minimumf %122, %123 : vector<16x128xf32>
    %125 = arith.subf %121, %124 : vector<16x128xf32>
    %126 = arith.mulf %118, %125 : vector<16x128xf32>
    %cst_21 = arith.constant 9.99999996E-13 : f32
    %127 = vector.broadcast %cst_21 : f32 to vector<16x128xf32>
    %128 = arith.maximumf %126, %127 : vector<16x128xf32>
    %129 = tpu.reciprocal %111 {approx = true} : vector<16x128xf32> -> vector<16x128xf32>
    %130 = arith.mulf %111, %129 : vector<16x128xf32>
    %cst_22 = arith.constant 2.000000e+00 : f32
    %131 = vector.broadcast %cst_22 : f32 to vector<16x128xf32>
    %132 = arith.subf %131, %130 : vector<16x128xf32>
    %133 = arith.mulf %129, %132 : vector<16x128xf32>
    %134 = arith.mulf %105, %133 : vector<16x128xf32>
    %cst_23 = arith.constant 1.000000e+00 : f32
    %135 = vector.broadcast %cst_23 : f32 to vector<16x128xf32>
    %136 = arith.subf %135, %134 : vector<16x128xf32>
    %137 = tpu.reciprocal %128 {approx = true} : vector<16x128xf32> -> vector<16x128xf32>
    %138 = arith.mulf %128, %137 : vector<16x128xf32>
    %cst_24 = arith.constant 2.000000e+00 : f32
    %139 = vector.broadcast %cst_24 : f32 to vector<16x128xf32>
    %140 = arith.subf %139, %138 : vector<16x128xf32>
    %141 = arith.mulf %137, %140 : vector<16x128xf32>
    %142 = arith.mulf %111, %141 : vector<16x128xf32>
    %143 = arith.subf %136, %142 : vector<16x128xf32>
    %cst_25 = arith.constant 2.000000e+00 : f32
    %144 = vector.broadcast %cst_25 : f32 to vector<16x128xf32>
    %145 = arith.mulf %144, %143 : vector<16x128xf32>
    %146 = arith.addf %40, %145 : vector<16x128xf32>
    %c0_26 = arith.constant 0 : index
    %c0_27 = arith.constant 0 : index
    %147 = vector.load %arg6[%c0_26, %c0_27] : memref<16x128xf32, #tpu.memory_space<vmem>>, vector<16x128xf32>
    tpu.vector_store %arg6[%c0_26, %c0_27], %146 {strides = array<i32>} : memref<16x128xf32, #tpu.memory_space<vmem>>, vector<16x128xf32>,
    return
  }
  func.func @transform_0(%arg0: i32, %arg1: i32) -> (i32, i32) {
    %c0_i32 = arith.constant 0 : i32
    %c0_i32_0 = arith.constant 0 : i32
    return %arg0, %c0_i32 : i32, i32
  }
  func.func @transform_1(%arg0: i32, %arg1: i32) -> (i32, i32) {
    %c0_i32 = arith.constant 0 : i32
    %c0_i32_0 = arith.constant 0 : i32
    return %arg0, %c0_i32 : i32, i32
  }
  func.func @transform_2(%arg0: i32, %arg1: i32) -> (i32, i32) {
    %c0_i32 = arith.constant 0 : i32
    %c0_i32_0 = arith.constant 0 : i32
    return %c0_i32, %arg1 : i32, i32
  }
  func.func @transform_3(%arg0: i32, %arg1: i32) -> (i32, i32) {
    %c0_i32 = arith.constant 0 : i32
    %c0_i32_0 = arith.constant 0 : i32
    return %c0_i32, %arg1 : i32, i32
  }
  func.func @transform_4(%arg0: i32, %arg1: i32) -> (i32, i32) {
    %c0_i32 = arith.constant 0 : i32
    return %arg0, %arg1 : i32, i32
  }
}

</mosaic_0001>

<bundles_post_ra>
// kernel: tpu_custom_call.1
= control target key start
LH: loop header
LB: loop body
LE: loop exit
PB: predicated region body
PF: predicated region fallthrough
CT: control target
= control target key end

     0   :  { %9 = vsyncpa [#allocation4], 0  ;;  %s788_s0 = inlined_call_operand.vmem [shape: f32[16,128], index: 0, kind: input, shape index: {}]   ;;  %s789_s1 = inlined_call_operand.vmem [shape: f32[16,4], index: 1, kind: input, shape index: {}]   ;;  %s790_s2 = inlined_call_operand.hbm [shape: bf16[128,128], index: 2, kind: input, shape index: {}]   ;;  %s791_s3 = inlined_call_operand.vmem [shape: f32[4,128], index: 3, kind: input, shape index: {}]   ;;  %s792_s4 = inlined_call_operand.hbm [shape: f32[16,128], index: 4, kind: output, shape index: {}]  }
   0x1   :  { %10 = vsyncpa [#allocation5], 0  ;;  %s655_s15 = smov [#allocation3]   ;;  %s607_s19 = scalar_lea.hbm %s790_s2, 1024 }
   0x2   :  { %s20_s16 = sshll.u32 %s655_s15, 4  ;;  %p608_p0 = scmp.ne.s32.totalorder %s790_s2, %s607_s19  ;;  %s21_s16 = int_to_ptr.vmem [resolvable:$true] %s20_s16 }
   0x3   :  { %p611_p1 = scmp.lt.u32.totalorder %s607_s19, %s790_s2 }
   0x5   :  { %p613_p2 = pnand %p611_p1, %p608_p0 }
   0x7   :  { %616 = shalt.err (!%p613_p2)
}
   0x8   :  { %s617_s24 = scalar_lea.vmem %s21_s16, 1024  ;;  %p622_p4 = scmp.lt.s32.totalorder %s21_s16, %s21_s16 }
   0x9   :  { %p618_p3 = scmp.ne.s32.totalorder %s21_s16, %s617_s24  ;;  %p623_p5 = scmp.lt.s32.totalorder %s617_s24, %s617_s24 }
   0xb   :  { %p624_p6 = por %p623_p5, %p622_p4 }
   0xd   :  { %p625_p7 = pnand %p624_p6, %p618_p3 }
   0xf   :  { %628 = shalt.err (!%p625_p7)
}
  0x10   :  { %s656_s25 = smov 64   ;;  %s657_s26 = smov 4  }
  0x11   :  { %26 = dma.hbm_to_vmem [thread:$0]  %s790_s2, 1024, %s21_s16, [#allocation4], %s656_s25, %s656_s25, %s657_s26  }
  0x12   :  { %651 = dma.done.wait [#allocation4], 1024  }
  0x13   :  { %652 = vsyncadd [#allocation4], 4294966272  ;;  %v36_v0 = vld [vmem:[%s788_s0] sm:$0xff]  ;;  %v37_v1 = vld [vmem:[%s788_s0 + $0x8] sm:$0xff]  ;;  %s658_s2 = smov 126   ;;  %v659_v21 = vmov 0   ;;  %v116_v57 = vlaneseq }
  0x14   :  { %38 = vmax.xlane.f32.xlu0 %v36_v0  ;;  %v713_v2 = vld [vmem:[%s789_s1] sm:$0xff]  ;;  %v475_v5 = vld [vmem:[#allocation3 + $0x8] sm:$0xff]   ;;  %v476_v16 = vld [vmem:[#allocation3 + $0x10] sm:$0xff]   ;;  %580 = vset.pattern.permute.xlu1 %v659_v21  ;;  %v661_v37 = vmov 1   ;;  %v662_v50 = vmov 3   ;;  %v663_v53 = vmov 2  }
  0x15   :  { %v253_v3 = vmul.f32 0.5, %v713_v2  ;;  %v444_v4 = vld [vmem:[#allocation3] sm:$0xff]   ;;  %v101_v15 = vld [vmem:[%s789_s1 + $0x8] sm:$0xff]  ;;  %v477_v20 = vld [vmem:[#allocation3 + $0x18] sm:$0xff]   ;;  %579 = vset.pattern.permute.xlu0 %v659_v21  ;;  %s660_s1 = smov 127   ;;  %v103_v49 = vmul.f32 5.0, %v713_v2 }
  0x16   :  { %536 = vmatprep.subr.bf16.mxu0 %v444_v4  ;;  %v254_v19 = vmul.f32 0.5, %v101_v15  ;;  %v478_v23 = vld [vmem:[#allocation3 + $0x20] sm:$0xff]   ;;  %v479_v24 = vld [vmem:[#allocation3 + $0x28] sm:$0xff]   ;;  %v480_v25 = vld [vmem:[#allocation3 + $0x30] sm:$0xff]   ;;  %v104_v46 = vmul.f32 5.0, %v101_v15  ;;  %v746_v60 = vshrl.u32 %v116_v57, 7 }
  0x17   :  { %538 = vmatpush3.bf16.msra.mxu0 %v444_v4  ;;  %v481_v26 = vld [vmem:[#allocation3 + $0x38] sm:$0xff]   ;;  %v743_v55 = vld [vmem:[%s791_s3] sm:$0xf]  ;;  %s664_s3 = smov [#allocation6]  }
  0x18   :  { %40 = vmax.xlane.f32.xlu0 %v37_v1  ;;  %540 = vmatprep.subr.bf16.mxu0 %v475_v5  ;;  %v267_v58 = vmul.f32 0.5, %v743_v55  ;;  %s431_s12 = sshll.u32 %s664_s3, 4  ;;  %s432_s12 = int_to_ptr.vmem [resolvable:$true] %s431_s12 }
  0x19   :  { %s629_s13 = scalar_lea.vmem %s432_s12, 256  ;;  %p634_p9 = scmp.lt.s32.totalorder %s432_s12, %s432_s12 }
  0x1a   :  { %v269_v61 = vrot.slane %v267_v58, 2  ;;  %p630_p8 = scmp.ne.s32.totalorder %s432_s12, %s629_s13  ;;  %p635_p10 = scmp.lt.s32.totalorder %s629_s13, %s629_s13 }
  0x1b   :  { %542 = vmatpush3.bf16.msra.mxu0 %v475_v5 }
  0x1c   :  { %544 = vmatprep.subr.bf16.mxu0 %v476_v16  ;;  %v271_v63 = vsub.f32 %v743_v55, %v269_v61  ;;  %p636_p11 = por %p635_p10, %p634_p9 }
  0x1e   :  { %p637_p12 = pnand %p636_p11, %p630_p8 }
  0x1f   :  { %546 = vmatpush3.bf16.msra.mxu0 %v476_v16 }
  0x20   :  { %548 = vmatprep.subr.bf16.mxu0 %v477_v20 }
  0x23   :  { %550 = vmatpush3.bf16.msra.mxu0 %v477_v20 }
  0x24   :  { %552 = vmatprep.subr.bf16.mxu0 %v478_v23 }
  0x27   :  { %554 = vmatpush3.bf16.msra.mxu0 %v478_v23 }
  0x28   :  { %556 = vmatprep.subr.bf16.mxu0 %v479_v24 }
  0x2b   :  { %558 = vmatpush3.bf16.msra.mxu0 %v479_v24 }
  0x2c   :  { %560 = vmatprep.subr.bf16.mxu0 %v480_v25 }
  0x2e   :  { %257 = vrot.lane.b32.xlu0 %v253_v3, %s658_s2 }
  0x2f   :  { %562 = vmatpush3.bf16.msra.mxu0 %v480_v25 }
  0x30   :  { %564 = vmatprep.subr.bf16.mxu0 %v481_v26 }
  0x33   :  { %566 = vmatpush3.bf16.msra.mxu0 %v481_v26 }
  0xa1   :  { %v39_v6 = vpop.xlane.xlu0 %38 }
  0xa2   :  { %v42_v7 = vsub.f32 %v36_v0, %v39_v6  ;;  %v750_v0 = vsub.s32 1, %v746_v60 }
  0xa4   :  { %v44_v8 = vmul.f32 1.442695, %v42_v7  ;;  %v351_v3 = vrot.slane %v271_v63, %v750_v0 }
  0xa5   :  { %v41_v9 = vpop.xlane.xlu0 %40 }
  0xa6   :  { %591 = vpow2.f32 %v44_v8  ;;  %v43_v10 = vsub.f32 %v37_v1, %v41_v9  ;;  %v753_v1 = vsub.s32 0, %v746_v60 }
  0xa8   :  { %v46_v11 = vmul.f32 1.442695, %v43_v10  ;;  %v319_v8 = vrot.slane %v271_v63, %v753_v1 }
  0xa9   :  { %v258_v14 = vpop.permute.xlu0 %257 }
  0xaa   :  { %593 = vpow2.f32 %v46_v11  ;;  %v724_v17 = vsub.f32 %v713_v2, %v258_v14  ;;  %v265_v18 = vadd.f32 %v258_v14, %v713_v2  ;;  %v272_v2 = vadd.f32 %v269_v61, %v743_v55 }
  0xac   :  { %292 = vperm.xlu0 %579, %v265_v18   ;;  %v273_v22 = vsub.f32 %v265_v18, %v724_v17  ;;  %v285_v5 = vsub.f32 %v272_v2, %v271_v63  ;;  %v303_v7 = vrot.slane %v272_v2, %v753_v1  ;;  %v337_v9 = vrot.slane %v272_v2, %v750_v0 }
  0xad   :  { %v105_v63 = vmul.f32 5.0, %v743_v55 }
  0xae   :  { %v287_v11 = vrot.slane %v285_v5, 1 }
  0xaf   :  { %v210_v55 = vrot.slane %v105_v63, %v750_v0 }
  0xb0   :  { %v592_v12 = vpop.eup %591 }
  0xb1   :  { %48 = vadd.xlane.f32.xlu1 %v592_v12 }
  0xb4   :  { %v717_v13 = vpop.eup %593 }
  0xb5   :  { %50 = vadd.xlane.f32.xlu1 %v717_v13 }
  0xc6   :  { %259 = vrot.lane.b32.xlu1 %v254_v19, %s658_s2 }
  0xca   :  { %277 = vrot.lane.b32.xlu1 %v273_v22, %s660_s1 }
 0x12b   :  { %v293_v62 = vpop.permute.xlu0 %292 }
 0x12c   :  { %v304_v14 = vmin.f32 %v293_v62, %v303_v7 }
 0x13e   :  { %v49_v27 = vpop.xlane.xlu1 %48 }
 0x13f   :  { %595 = vrcp.f32 %v49_v27 }
 0x142   :  { %v51_v28 = vpop.xlane.xlu1 %50 }
 0x143   :  { %597 = vrcp.f32 %v51_v28 }
 0x146   :  { %v260_v29 = vpop.permute.xlu1 %259 }
 0x147   :  { %v264_v30 = vsub.f32 %v101_v15, %v260_v29  ;;  %v266_v31 = vadd.f32 %v260_v29, %v101_v15  ;;  %v380_v29 = vmax.f32 %v293_v62, %v303_v7 }
 0x149   :  { %v596_v32 = vpop.eup %595  ;;  %313 = vperm.xlu0 %579, %v264_v30   ;;  %v274_v33 = vsub.f32 %v266_v31, %v264_v30 }
 0x14a   :  { %v54_v34 = vmul.f32 %v596_v32, %v49_v27  ;;  %v278_v39 = vpop.permute.xlu1 %277 }
 0x14b   :  { %279 = vrot.lane.b32.xlu1 %v274_v33, %s660_s1  ;;  %v283_v43 = vmul.f32 %v278_v39, %v273_v22 }
 0x14c   :  { %v56_v35 = vsub.f32 2.0, %v54_v34 }
 0x14d   :  { %v598_v36 = vpop.eup %597  ;;  %582 = vset.pattern.permute.xlu0 %v661_v37 }
 0x14e   :  { %v55_v38 = vmul.f32 %v598_v36, %v51_v28  ;;  %331 = vperm.xlu0 %582, %v266_v31   ;;  %v58_v40 = vmul.f32 %v596_v32, %v56_v35 }
 0x14f   :  { %297 = vperm.xlu1 %580, %v266_v31  }
 0x150   :  { %v57_v41 = vsub.f32 2.0, %v55_v38  ;;  %v60_v42 = vmul.f32 -1.0, %v58_v40 }
 0x152   :  { %v59_v44 = vmul.f32 %v598_v36, %v57_v41  ;;  %583 = vset.pattern.permute.xlu0 %v659_v21  ;;  %v62_v45 = vmul.f32 %v592_v12, %v60_v42 }
 0x153   :  { %308 = vperm.xlu1 %580, %v724_v17   ;;  %362 = vperm.xlu0 %583, %v283_v43  }
 0x154   :  { %v61_v47 = vmul.f32 -1.0, %v59_v44  ;;  %532 = vmatprep.mubr.f32.mxu0 %v62_v45 }
 0x156   :  { %v63_v48 = vmul.f32 %v717_v13, %v61_v47 }
 0x157   :  { %581 = vset.pattern.permute.xlu1 %v661_v37  ;;  %113 = vperm.xlu0 %583, %v104_v46  }
 0x158   :  { %533 = vmatmul.mubr.f32.vlgmr.msra.gmra.mrb[0].mxu0 %v63_v48  ;;  %327 = vperm.xlu1 %581, %v265_v18  }
 0x15b   :  { %586 = vset.pattern.permute.xlu0 %v661_v37 }
 0x15c   :  { %341 = vperm.xlu1 %581, %v724_v17   ;;  %204 = vperm.xlu0 %586, %v104_v46   ;;  %v289_v17 = vmul.f32 %v287_v11, %v285_v5 }
 0x15e   :  { %v373_v20 = vrot.slane %v289_v17, %v753_v1 }
 0x160   :  { %345 = vperm.xlu1 %581, %v264_v30   ;;  %588 = vset.pattern.permute.xlu0 %v662_v50 }
 0x161   :  { %236 = vperm.xlu0 %588, %v103_v49  }
 0x164   :  { %584 = vset.pattern.permute.xlu1 %v659_v21 }
 0x165   :  { %590 = vset.pattern.permute.xlu0 %v659_v21 }
 0x1bd   :  { %v280_v51 = vpop.permute.xlu1 %279 }
 0x1be   :  { %v284_v52 = vmul.f32 %v280_v51, %v274_v33 }
 0x1c0   :  { %367 = vperm.xlu1 %584, %v284_v52  }
 0x1c4   :  { %108 = vperm.xlu1 %584, %v103_v49  }
 0x1c8   :  { %585 = vset.pattern.permute.xlu1 %v661_v37  ;;  %v314_v6 = vpop.permute.xlu0 %313 }
 0x1c9   :  { %200 = vperm.xlu1 %585, %v103_v49   ;;  %v383_v42 = vmin.f32 %v314_v6, %v319_v8 }
 0x1cd   :  { %587 = vset.pattern.permute.xlu1 %v663_v53  ;;  %v332_v16 = vpop.permute.xlu0 %331 }
 0x1ce   :  { %218 = vperm.xlu1 %587, %v103_v49   ;;  %v738_v54 = vpop.permute.xlu1 %297  ;;  %v387_v39 = vmax.f32 %v332_v16, %v337_v9  ;;  %v339_v43 = vmin.f32 %v332_v16, %v337_v9 }
 0x1cf   :  { %v381_v40 = vmax.f32 %v738_v54, %v303_v7  ;;  %v305_v44 = vmin.f32 %v738_v54, %v303_v7  ;;  %v119_v7 = vrot.slane %v105_v63, %v753_v1 }
 0x1d1   :  { %v385_v47 = vsub.f32 %v381_v40, %v383_v42 }
 0x1d2   :  { %222 = vperm.xlu1 %587, %v104_v46   ;;  %v309_v56 = vpop.permute.xlu1 %308  ;;  %v363_v22 = vpop.permute.xlu0 %362 }
 0x1d3   :  { %v320_v12 = vmax.f32 %v309_v56, %v319_v8  ;;  %v374_v24 = vadd.f32 %v373_v20, %v363_v22  ;;  %v382_v26 = vmin.f32 %v309_v56, %v319_v8 }
 0x1d5   :  { %v322_v18 = vsub.f32 %v304_v14, %v320_v12  ;;  %v384_v31 = vsub.f32 %v380_v29, %v382_v26 }
 0x1d6   :  { %589 = vset.pattern.permute.xlu1 %v662_v50 }
 0x1d7   :  { %240 = vperm.xlu1 %589, %v104_v46   ;;  %v328_v59 = vpop.permute.xlu1 %327  ;;  %v324_v21 = vmax.f32 %v322_v18, 0.0  ;;  %v321_v46 = vmax.f32 %v314_v6, %v319_v8 }
 0x1d8   :  { %v338_v13 = vmin.f32 %v328_v59, %v337_v9  ;;  %v386_v27 = vmax.f32 %v328_v59, %v337_v9  ;;  %v114_v59 = vpop.permute.xlu0 %113  ;;  %v245_v9 = vsub.s32 3, %v746_v60 }
 0x1d9   :  { %v323_v50 = vsub.f32 %v305_v44, %v321_v46  ;;  %v121_v26 = vsub.f32 %v114_v59, %v119_v7 }
 0x1da   :  { %v246_v16 = vrot.slane %v105_v63, %v245_v9 }
 0x1db   :  { %v342_v4 = vpop.permute.xlu1 %341  ;;  %v325_v56 = vmax.f32 %v323_v50, 0.0 }
 0x1dc   :  { %v352_v10 = vmax.f32 %v342_v4, %v351_v3  ;;  %v388_v25 = vmin.f32 %v342_v4, %v351_v3 }
 0x1de   :  { %v354_v15 = vsub.f32 %v338_v13, %v352_v10  ;;  %v390_v30 = vsub.f32 %v386_v27, %v388_v25  ;;  %v205_v10 = vpop.permute.xlu0 %204  ;;  %v227_v13 = vsub.s32 2, %v746_v60 }
 0x1df   :  { %v346_v36 = vpop.permute.xlu1 %345 }
 0x1e0   :  { %v356_v19 = vmax.f32 %v354_v15, 0.0  ;;  %v392_v35 = vmul.f32 %v390_v30, %v384_v31  ;;  %v389_v38 = vmin.f32 %v346_v36, %v351_v3  ;;  %v353_v41 = vmax.f32 %v346_v36, %v351_v3 }
 0x1e2   :  { %v358_v23 = vmul.f32 %v356_v19, %v324_v21  ;;  %v394_v37 = vmax.f32 %v392_v35, 1e-12  ;;  %v391_v45 = vsub.f32 %v387_v39, %v389_v38  ;;  %v355_v48 = vsub.f32 %v339_v43, %v353_v41  ;;  %v237_v18 = vpop.permute.xlu0 %236 }
 0x1e3   :  { %v228_v21 = vrot.slane %v105_v63, %v227_v13  ;;  %v247_v25 = vsub.f32 %v237_v18, %v246_v16  ;;  %v212_v38 = vsub.f32 %v205_v10, %v210_v55 }
 0x1e4   :  { %v376_v28 = vsub.f32 %v374_v24, %v358_v23  ;;  %v393_v51 = vmul.f32 %v391_v45, %v385_v47  ;;  %v357_v53 = vmax.f32 %v355_v48, 0.0 }
 0x1e5   :  { %v249_v35 = vand.u32 2147483647, %v247_v25 }
 0x1e6   :  { %v761_v32 = vmax.f32 %v376_v28, 1e-12  ;;  %v395_v57 = vmax.f32 %v393_v51, 1e-12  ;;  %v359_v2 = vmul.f32 %v357_v53, %v325_v56 }
 0x1e8   :  { %599 = vrcp.f32 %v761_v32 }
 0x1e9   :  { %601 = vrcp.f32 %v394_v37 }
 0x1ea   :  { %603 = vrcp.f32 %v395_v57 }
 0x1f2   :  { %v600_v49 = vpop.eup %599 }
 0x1f3   :  { %v398_v52 = vmul.f32 %v600_v49, %v761_v32  ;;  %v602_v58 = vpop.eup %601 }
 0x1f4   :  { %v410_v3 = vmul.f32 %v602_v58, %v394_v37  ;;  %v604_v1 = vpop.eup %603  ;;  %v123_v37 = vand.u32 2147483647, %v121_v26 }
 0x1f5   :  { %v400_v62 = vsub.f32 2.0, %v398_v52  ;;  %v411_v30 = vmul.f32 %v604_v1, %v395_v57 }
 0x1f6   :  { %v412_v11 = vsub.f32 2.0, %v410_v3 }
 0x1f7   :  { %v402_v6 = vmul.f32 %v600_v49, %v400_v62  ;;  %v413_v42 = vsub.f32 2.0, %v411_v30 }
 0x1f8   :  { %v414_v19 = vmul.f32 %v602_v58, %v412_v11 }
 0x1f9   :  { %v404_v14 = vmul.f32 %v402_v6, %v358_v23  ;;  %v415_v50 = vmul.f32 %v604_v1, %v413_v42 }
 0x1fa   :  { %v416_v60 = vmul.f32 %v414_v19, %v761_v32 }
 0x1fb   :  { %v406_v22 = vsub.f32 1.0, %v404_v14 }
 0x1fd   :  { %v418_v36 = vsub.f32 %v406_v22, %v416_v60 }
 0x1ff   :  { %v420_v46 = vmul.f32 2.0, %v418_v36 }
 0x22b   :  { %v763_v33 = vpop.f32.mrb[0].mxu0 }
 0x22c   :  { %v190_v34 = vpop.f32.mrb[1].mxu0  ;;  %v196_v47 = vadd.f32 %v763_v33, %v123_v37 }
 0x23f   :  { %v368_v61 = vpop.permute.xlu1 %367 }
 0x240   :  { %v375_v54 = vadd.f32 %v373_v20, %v368_v61 }
 0x242   :  { %v377_v4 = vsub.f32 %v375_v54, %v359_v2 }
 0x243   :  { %v109_v5 = vpop.permute.xlu1 %108 }
 0x244   :  { %v379_v8 = vmax.f32 %v377_v4, 1e-12  ;;  %v120_v12 = vsub.f32 %v109_v5, %v119_v7 }
 0x246   :  { %605 = vrcp.f32 %v379_v8  ;;  %v122_v20 = vand.u32 2147483647, %v120_v12  ;;  %v417_v58 = vmul.f32 %v415_v50, %v379_v8 }
 0x248   :  { %v201_v15 = vpop.permute.xlu1 %200  ;;  %v191_v28 = vadd.f32 %v190_v34, %v122_v20  ;;  %v214_v34 = vand.u32 2147483647, %v212_v38 }
 0x249   :  { %v211_v17 = vsub.f32 %v201_v15, %v210_v55 }
 0x24a   :  { %v216_v56 = vadd.f32 %v214_v34, %v196_v47 }
 0x24b   :  { %v213_v24 = vand.u32 2147483647, %v211_v17 }
 0x24d   :  { %v219_v27 = vpop.permute.xlu1 %218  ;;  %v215_v23 = vadd.f32 %v213_v24, %v191_v28 }
 0x24e   :  { %v229_v29 = vsub.f32 %v219_v27, %v228_v21 }
 0x250   :  { %v606_v0 = vpop.eup %605  ;;  %v231_v31 = vand.u32 2147483647, %v229_v29 }
 0x251   :  { %v399_v39 = vmul.f32 %v606_v0, %v379_v8  ;;  %v223_v40 = vpop.permute.xlu1 %222 }
 0x252   :  { %v233_v41 = vadd.f32 %v231_v31, %v215_v23  ;;  %v230_v44 = vsub.f32 %v223_v40, %v228_v21 }
 0x253   :  { %v401_v43 = vsub.f32 2.0, %v399_v39 }
 0x254   :  { %v251_v45 = vadd.f32 %v249_v35, %v233_v41  ;;  %v232_v52 = vand.u32 2147483647, %v230_v44 }
 0x255   :  { %v403_v32 = vmul.f32 %v606_v0, %v401_v43 }
 0x256   :  { %v422_v48 = vadd.f32 %v420_v46, %v251_v45  ;;  %v241_v49 = vpop.permute.xlu1 %240  ;;  %v234_v61 = vadd.f32 %v232_v52, %v216_v56 }
 0x257   :  { %v405_v51 = vmul.f32 %v403_v32, %v359_v2  ;;  %v248_v53 = vsub.f32 %v241_v49, %v246_v16 }
 0x258   :  { %424 = vst [vmem:[#allocation6] sm:$0xff] %v422_v48 }
 0x259   :  { %v407_v57 = vsub.f32 1.0, %v405_v51  ;;  %v250_v59 = vand.u32 2147483647, %v248_v53 }
 0x25b   :  { %v419_v62 = vsub.f32 %v407_v57, %v417_v58  ;;  %v252_v54 = vadd.f32 %v250_v59, %v234_v61 }
 0x25d   :  { %v421_v63 = vmul.f32 2.0, %v419_v62 }
 0x25f   :  { %v423_v3 = vadd.f32 %v421_v63, %v252_v54 }
 0x261   :  { %425 = vst [vmem:[#allocation6 + $0x8] sm:$0xff] %v423_v3 }
 0x262   :  { %640 = shalt.err (!%p637_p12)
}
 0x263   :  { %s641_s16 = scalar_lea.hbm %s792_s4, 256 }
 0x264   :  { %p642_p13 = scmp.ne.s32.totalorder %s792_s4, %s641_s16  ;;  %p645_p0 = scmp.lt.u32.totalorder %s641_s16, %s792_s4 }
 0x266   :  { %p647_p1 = pnand %p645_p0, %p642_p13 }
 0x268   :  { %650 = shalt.err (!%p647_p1)
}
 0x269   :  { %s665_s21 = smov 128   ;;  %s666_s22 = smov 8  }
 0x26a   :  { %437 = dma.vmem_to_hbm [thread:$0]  %s432_s12, 256, %s792_s4, [#allocation5], %s665_s21, %s665_s21, %s666_s22  }
 0x26b   :  { %653 = dma.done.wait [#allocation5], 256  }
 0x26c   :  { %654 = vsyncadd [#allocation5], 4294967040 }
 0x26d   :  { %441 = vsyncpa [#allocation4], 1 }
 0x26e   :  { %442 = vsyncpa [#allocation5], 1 }

</bundles_post_ra>
